<compile_context>
chip_gen: v5e
topology: v5e:2x2
jax: 0.10.0
libtpu: 0.0.40
codegen_flags: <defaults>
</compile_context>

<pallas_src>
import functools
import math

import jax
import jax.numpy as jnp
from jax.experimental import pallas as pl
from jax.experimental.pallas import tpu as pltpu


def _round_up(x, m):
    return ((x + m - 1) // m) * m


def _linear_embed_kernel(v_ref, w_ref, b_ref, o_ref, *, use_act):
    # v_ref: (TM, F)  w_ref: (F, C)  b_ref: (1, C)  o_ref: (TM, C)
    acc = jnp.dot(v_ref[...], w_ref[...], preferred_element_type=jnp.float32)
    acc = acc + b_ref[...].astype(jnp.float32)  # (1, C) broadcasts over rows
    if use_act == "relu":
        acc = jnp.maximum(acc, 0.0)
    elif use_act == "softmax":
        # C is never tiled, so the full softmax extent is present. Reductions
        # are per-row, so garbage rows in a ragged last block stay contained
        # (their outputs are masked on write).
        m = jnp.max(acc, axis=-1, keepdims=True)
        e = jnp.exp(acc - m)
        acc = e / jnp.sum(e, axis=-1, keepdims=True)  # exact div (1e-5 tol)
    # use_act=None: linear output, nothing to do.
    o_ref[...] = acc.astype(o_ref.dtype)


def linear_embedding(v, w, b, use_act="relu", *,
                     vmem_budget_bytes=32 * 1024 * 1024,
                     vmem_limit_bytes=48 * 1024 * 1024,
                     tm_hard_cap=4096):
    """out = act(v @ w + b). v: [..., F], w: [F, C], b: [C]."""
    orig_shape = v.shape
    F = orig_shape[-1]
    C = w.shape[1]
    M = math.prod(orig_shape[:-1]) if len(orig_shape) > 1 else 1
    out_shape = (*orig_shape[:-1], C)
    if M == 0:
        return jnp.zeros(out_shape, v.dtype)

    v2d = v.reshape(M, F)
    b2d = b.reshape(1, C)

    in_bytes = jnp.dtype(v.dtype).itemsize
    out_bytes = in_bytes
    sub = 8 if in_bytes >= 4 else 16  # sublane count for the dtype

    # --- TM selection: grow toward the VMEM budget, using PHYSICAL tile
    # footprints (last dim rounds to 128 lanes, second-to-last to sublanes).
    Fp = _round_up(F, 128)
    Cp = _round_up(C, 128)
    fixed = (2 * _round_up(F, sub) * Cp * in_bytes   # W (count 2 bufs, conservative)
             + 2 * sub * Cp * 4)                     # B
    per_row = 2 * Fp * in_bytes + 2 * Cp * out_bytes  # double-buffered V + O tiles
    tm_cap = max(sub, (vmem_budget_bytes - fixed) // per_row)
    tm_cap = max(sub, (tm_cap // sub) * sub)

    TM = min(_round_up(M, sub), tm_cap, tm_hard_cap)
    TM = max(sub, (TM // sub) * sub)
    # v7x megacore: guarantee >= 2 grid steps when M is big enough to split.
    if M > 2 * sub and pl.cdiv(M, TM) < 2:
        TM = max(sub, _round_up(pl.cdiv(M, 2), sub))

    grid = (pl.cdiv(M, TM),)

    kernel = functools.partial(_linear_embed_kernel, use_act=use_act)

    out2d = pl.pallas_call(
        kernel,
        out_shape=jax.ShapeDtypeStruct((M, C), v.dtype),
        grid=grid,
        in_specs=[
            pl.BlockSpec((TM, F), lambda i: (i, 0)),   # V: tiled over rows
            pl.BlockSpec((F, C), lambda i: (0, 0)),    # W: VMEM-resident
            pl.BlockSpec((1, C), lambda i: (0, 0)),    # B: VMEM-resident
        ],
        out_specs=pl.BlockSpec((TM, C), lambda i: (i, 0)),
        compiler_params=pltpu.CompilerParams(
            dimension_semantics=("parallel",),         # megacore-shardable on v7x
            vmem_limit_bytes=vmem_limit_bytes,
        ),
        cost_estimate=pl.CostEstimate(
            flops=2 * M * F * C,
            transcendentals=(M * C if use_act == "softmax" else 0),
            bytes_accessed=(M * F + F * C + C) * in_bytes + M * C * out_bytes,
        ),
    )(v2d, w, b2d)

    return out2d.reshape(out_shape)


# TODO(synk): K-tiling (trailing "arbitrary" grid axis over F with an f32 VMEM
# accumulator, pl.when init/finalize) only needed once F*Cp*4 approaches the
# VMEM budget (e.g. F=4096, C=8192 f32 W = 128 MiB on v7x); W fits resident
# for typical LinearEmbedding sizes.


def init_params(key, input_size, output_size):
    """Deterministic init matching the PyTorch module's __init__."""
    kw, kb = jax.random.split(key)
    # xavier_normal_: std = sqrt(2 / (fan_in + fan_out))
    std_w = math.sqrt(2.0 / (input_size + output_size))
    W = jax.random.normal(kw, (input_size, output_size), jnp.float32) * std_w
    # normal_(mean=0.0001, std=1e-5)
    B = 0.0001 + 1e-5 * jax.random.normal(kb, (output_size,), jnp.float32)
    return W, B


def _ref(v, w, b, use_act):
    out = jnp.matmul(v, w) + b
    if use_act == "relu":
        out = jnp.maximum(out, 0.0)
    elif use_act == "softmax":
        out = jax.nn.softmax(out, axis=-1)
    return out


if __name__ == "__main__":
    key = jax.random.PRNGKey(0)
    k_in, k_in2, k_param = jax.random.split(key, 3)

    batch, seq, F_in, C_out = 2, 8, 16, 32
    V = jax.random.normal(k_in, (batch, seq, F_in), jnp.float32)
    W, B = init_params(k_param, F_in, C_out)

    # Small shape (matches the module demo), relu path (single grid step).
    out = linear_embedding(V, W, B, use_act="relu")
    jax.block_until_ready(out)
    assert out.shape == (batch, seq, C_out), out.shape
    assert jnp.allclose(out, _ref(V, W, B, "relu"), atol=1e-5, rtol=1e-5), \
        "relu mismatch vs reference"

    # Softmax path (exact reciprocal; C=32 output stored natively, no pad).
    out_sm = linear_embedding(V, W, B, use_act="softmax")
    jax.block_until_ready(out_sm)
    assert jnp.allclose(out_sm, _ref(V, W, B, "softmax"), atol=1e-5, rtol=1e-5), \
        "softmax mismatch vs reference"

    # Larger M: exercises M-tiling with a ragged last block (M=900 -> TM=456,
    # grid=2) and the >=2-step megacore guarantee. No wrapper pad/slice.
    V_big = jax.random.normal(k_in2, (3, 300, F_in), jnp.float32)
    out_big = linear_embedding(V_big, W, B, use_act="relu")
    jax.block_until_ready(out_big)
    assert out_big.shape == (3, 300, C_out), out_big.shape
    assert jnp.allclose(out_big, _ref(V_big, W, B, "relu"), atol=1e-5, rtol=1e-5), \
        "tiled relu mismatch vs reference"

    # Ragged-block softmax (garbage padded rows must not leak into valid rows).
    out_big_sm = linear_embedding(V_big, W, B, use_act="softmax")
    jax.block_until_ready(out_big_sm)
    assert jnp.allclose(out_big_sm, _ref(V_big, W, B, "softmax"),
                        atol=1e-5, rtol=1e-5), "tiled softmax mismatch vs reference"

    print("KERNEL_OK")
</pallas_src>

<mosaic_0001>
module attributes {stable_mosaic.version = 11 : i64} {
  func.func @_linear_embed_kernel(%arg0: i32, %arg1: memref<16x16xf32, #tpu.memory_space<vmem>>, %arg2: memref<16x32xf32, #tpu.memory_space<vmem>>, %arg3: memref<1x32xf32, #tpu.memory_space<vmem>>, %arg4: memref<16x32xf32, #tpu.memory_space<vmem>>) attributes {dimension_semantics = [#tpu.dimension_semantics<parallel>], iteration_bounds = array<i64: 1>, scalar_prefetch = 0 : i64, scratch_operands = 0 : i64, tpu.core_type = #tpu.core_type<tc>, window_params = [{transform_indices = @transform_0, window_bounds = array<i64: 16, 16>}, {pipeline_mode = #tpu.pipeline_mode<synchronous>, transform_indices = @transform_1, window_bounds = array<i64: 16, 32>}, {pipeline_mode = #tpu.pipeline_mode<synchronous>, transform_indices = @transform_2, window_bounds = array<i64: 1, 32>}, {transform_indices = @transform_3, window_bounds = array<i64: 16, 32>}]} {
    %c0 = arith.constant 0 : index
    %c0_0 = arith.constant 0 : index
    %0 = vector.load %arg1[%c0, %c0_0] : memref<16x16xf32, #tpu.memory_space<vmem>>, vector<16x16xf32>
    %c0_1 = arith.constant 0 : index
    %c0_2 = arith.constant 0 : index
    %1 = vector.load %arg2[%c0_1, %c0_2] : memref<16x32xf32, #tpu.memory_space<vmem>>, vector<16x32xf32>
    %cst = arith.constant dense<0.000000e+00> : vector<16x32xf32>
    %2 = tpu.matmul %0, %1, %cst {dimension_numbers = #tpu.dot_dimension_numbers<[1], [0], [0], [1], [0, 0, 1, 1], [], []>} : vector<16x16xf32>, vector<16x32xf32>, vector<16x32xf32> -> vector<16x32xf32>
    %c0_3 = arith.constant 0 : index
    %c0_4 = arith.constant 0 : index
    %3 = vector.load %arg3[%c0_3, %c0_4] : memref<1x32xf32, #tpu.memory_space<vmem>>, vector<1x32xf32>
    %4 = vector.broadcast %3 : vector<1x32xf32> to vector<16x32xf32>
    %5 = arith.addf %2, %4 : vector<16x32xf32>
    %cst_5 = arith.constant 0.000000e+00 : f32
    %6 = vector.broadcast %cst_5 : f32 to vector<16x32xf32>
    %7 = arith.maximumf %5, %6 : vector<16x32xf32>
    %c0_6 = arith.constant 0 : index
    %c0_7 = arith.constant 0 : index
    %8 = vector.load %arg4[%c0_6, %c0_7] : memref<16x32xf32, #tpu.memory_space<vmem>>, vector<16x32xf32>
    tpu.vector_store %arg4[%c0_6, %c0_7], %7 {strides = array<i32>} : memref<16x32xf32, #tpu.memory_space<vmem>>, vector<16x32xf32>,
    return
  }
  func.func @transform_0(%arg0: i32) -> (i32, i32) {
    %c0_i32 = arith.constant 0 : i32
    %c0_i32_0 = arith.constant 0 : i32
    return %arg0, %c0_i32 : i32, i32
  }
  func.func @transform_1(%arg0: i32) -> (i32, i32) {
    %c0_i32 = arith.constant 0 : i32
    %c0_i32_0 = arith.constant 0 : i32
    %c0_i32_1 = arith.constant 0 : i32
    return %c0_i32, %c0_i32_0 : i32, i32
  }
  func.func @transform_2(%arg0: i32) -> (i32, i32) {
    %c0_i32 = arith.constant 0 : i32
    %c0_i32_0 = arith.constant 0 : i32
    %c0_i32_1 = arith.constant 0 : i32
    return %c0_i32, %c0_i32_0 : i32, i32
  }
  func.func @transform_3(%arg0: i32) -> (i32, i32) {
    %c0_i32 = arith.constant 0 : i32
    %c0_i32_0 = arith.constant 0 : i32
    return %arg0, %c0_i32 : i32, i32
  }
}

</mosaic_0001>

<bundles_post_ra>
// kernel: tpu_custom_call.1
= control target key start
LH: loop header
LB: loop body
LE: loop exit
PB: predicated region body
PF: predicated region fallthrough
CT: control target
= control target key end

     0   :  { %8 = vsyncpa [#allocation3], 0  ;;  %s244_s0 = inlined_call_operand.hbm [shape: f32[16,16], index: 0, kind: input, shape index: {}]   ;;  %s245_s1 = inlined_call_operand.hbm [shape: f32[16,32], index: 1, kind: input, shape index: {}]   ;;  %s246_s2 = inlined_call_operand.vmem [shape: f32[1,32], index: 2, kind: input, shape index: {}]   ;;  %s247_s3 = inlined_call_operand.hbm [shape: f32[16,32], index: 3, kind: output, shape index: {}]  }
   0x1   :  { %9 = vsyncpa [#allocation6], 0 }
   0x2   :  { %10 = vsyncpa [#allocation4], 0  ;;  %s15_s14 = sshll.u32 %s244_s0, 4  ;;  %s198_s15 = smov [#allocation2]   ;;  %s16_s14 = int_to_ptr.hbm [resolvable:$true] %s15_s14 }
   0x3   :  { %s17_s16 = sshll.u32 %s198_s15, 4  ;;  %s28_s19 = sshll.u32 %s245_s1, 4  ;;  %s18_s16 = int_to_ptr.vmem [resolvable:$true] %s17_s16  ;;  %s29_s19 = int_to_ptr.hbm [resolvable:$true] %s28_s19 }
   0x4   :  { %s199_s20 = smov 128   ;;  %s200_s21 = smov 8  }
   0x5   :  { %23 = dma.hbm_to_vmem [thread:$0]  %s16_s14, 256, %s18_s16, [#allocation3], %s199_s20, %s199_s20, %s200_s21  }
   0x6   :  { %s201_s22 = smov [#allocation5]  }
   0x7   :  { %s30_s23 = sshll.u32 %s201_s22, 4  ;;  %s31_s23 = int_to_ptr.vmem [resolvable:$true] %s30_s23 }
   0x8   :  { %36 = dma.hbm_to_vmem [thread:$0]  %s29_s19, 256, %s31_s23, [#allocation6], %s199_s20, %s199_s20, %s200_s21  }
   0x9   :  { %192 = dma.done.wait [#allocation3], 256  }
   0xa   :  { %193 = vsyncadd [#allocation3], 4294967040 }
   0xb   :  { %194 = dma.done.wait [#allocation6], 256  }
   0xc   :  { %195 = vsyncadd [#allocation6], 4294967040  ;;  %v50_v0 = vld [vmem:[#allocation5 + $0x8] sm:$0xff]  ;;  %v49_v1 = vld [vmem:[#allocation5] sm:$0xff]  ;;  %vm55_vm0 = vcmask 130048   ;;  %s202_s24 = smov [#allocation7]  }
   0xd   :  { %76 = vmatpush.msra.mxu0 %v50_v0  ;;  %112 = vmatpush.msra.mxu1 %v50_v0  ;;  %v47_v2 = vld [vmem:[#allocation2] sm:$0xff]  ;;  %v48_v3 = vld [vmem:[#allocation2 + $0x8] sm:$0xff]  ;;  %s94_s25 = sshll.u32 %s202_s24, 4  ;;  %s96_s28 = sshll.u32 %s247_s3, 4  ;;  %vm87_vm1 = vcmask 261120   ;;  %s95_s25 = int_to_ptr.vmem [resolvable:$true] %s94_s25  ;;  %s97_s28 = int_to_ptr.hbm [resolvable:$true] %s96_s28 }
   0xe   :  { %v119_v4 = vld [vmem:[%s246_s2] ss:$0 sm:$0xff] }
   0xf   :  { %77 = vmatpush.msra.mxu0 %v49_v1  ;;  %113 = vmatpush.msra.mxu1 %v49_v1 }
  0x10   :  { %110 = vmatmul.msk.f32.vlgmr.msra.gmra.mxu0 %vm55_vm0, %v47_v2  ;;  %111 = vmatmul.msk.f32.vlgmr.msra.gmra.mxu1 %vm55_vm0, %v48_v3 }
  0x8d   :  { %v79_v5 = vpop.f32.mrf.mxu0  ;;  %v82_v6 = vpop.f32.mrf.mxu1 }
  0x8e   :  { %v80_v7 = vadd.f32 %v119_v4, %v79_v5  ;;  %v83_v8 = vadd.f32 %v119_v4, %v82_v6 }
  0x90   :  { %v85_v9 = vmax.f32 %v80_v7, 0.0  ;;  %v86_v10 = vmax.f32 %v83_v8, 0.0 }
  0x92   :  { %88 = vst.msk [vmem:[#allocation7] sm:$0xff] %vm87_vm1, %v85_v9 }
  0x93   :  { %89 = vst.msk [vmem:[#allocation7 + $0x8] sm:$0xff] %vm87_vm1, %v86_v10 }
  0x94   :  { %102 = dma.vmem_to_hbm [thread:$0]  %s95_s25, 256, %s97_s28, [#allocation4], %s199_s20, %s199_s20, %s200_s21  }
  0x95   :  { %196 = dma.done.wait [#allocation4], 256  }
  0x96   :  { %197 = vsyncadd [#allocation4], 4294967040 }
  0x97   :  { %107 = vsyncpa [#allocation3], 1 }
  0x98   :  { %108 = vsyncpa [#allocation6], 1 }
  0x99   :  { %109 = vsyncpa [#allocation4], 1 }

</bundles_post_ra>
